<compile_context>
chip_gen: v7x
topology: tpu7x:2x2x1
jax: 0.10.0
libtpu: 0.0.40
codegen_flags: <defaults>
</compile_context>

<pallas_src>
import functools

import numpy as np
import jax
import jax.numpy as jnp
from jax.experimental import pallas as pl
from jax.experimental.pallas import tpu as pltpu

_DILATIONS = (1, 2, 4, 8, 16)


def _esp_kernel(x_ref, w1_ref, wf_ref, m_ref, o_ref, *,
                nb, roll_shifts, compute_dtype):
    """One block of `nb` images per grid step.

    x_ref : (nb, Cin, HW)   input, channel-major, spatial flattened on lanes
    w1_ref: (n, Cin)        1x1 reduce weights (transposed)
    wf_ref: (nOut, K)       folded dilated-conv + HFF + concat weights
    m_ref : (K, HW)         SAME-padding masks, rows aligned with W_fold columns
    o_ref : (nb, nOut, HW)  output block
    """
    w1 = w1_ref[...]          # hoisted out of the per-image loop
    wf = wf_ref[...]
    mask = m_ref[...]

    for b in range(nb):                                        # static python loop
        x = x_ref[b]                                           # (Cin, HW) f32

        # ---- Reduce: 1x1 conv == (n, Cin) @ (Cin, HW), lane-dense result ----
        out1 = jnp.dot(w1, x.astype(compute_dtype),
                       preferred_element_type=jnp.float32)     # (n, HW) f32
        out1 = out1.astype(compute_dtype)

        # ---- Transform + merge: one roll per active tap, one concat, one mask,
        #      one MXU matmul covering all 5 dilation groups -----------------
        pieces = [out1 if s == 0 else pltpu.roll(out1, shift=s, axis=1)
                  for s in roll_shifts]
        patches = pieces[0] if len(pieces) == 1 else jnp.concatenate(pieces, axis=0)
        patches = patches * mask                               # zero out-of-image taps
        acc = jnp.dot(wf, patches,
                      preferred_element_type=jnp.float32)      # (nOut, HW) f32

        # ---- Residual add (add=True, nIn == nOut) in f32; AIR == identity ----
        o_ref[b] = (acc + x).astype(o_ref.dtype)


def _fold_params(wc1, wd1, wds, H, W, compute_dtype):
    """Fold HFF sums + channel concat into one weight matrix; build tap masks.

    Returns kernel-layout params:
      w1t        : (n, Cin)  transposed 1x1 weights
      w_fold     : (nOut, K) one n-wide column block per active tap
      masks      : (K, HW)   validity mask (1 inside image, 0 in SAME zero-padding)
      roll_shifts: tuple of lane-roll amounts (0 == center tap, no roll)
    """
    wc1 = np.asarray(wc1)
    wd1 = np.asarray(wd1)
    wds = np.asarray(wds)
    n = wc1.shape[1]
    n1 = wd1.shape[-1]
    nOut = n1 + 4 * n
    HW = H * W

    w1t = jnp.asarray(wc1.T, dtype=compute_dtype)              # (n, Cin)

    group_weights = [wd1] + [wds[i] for i in range(4)]
    rr = np.arange(H)[:, None]
    cc = np.arange(W)[None, :]

    w_blocks, mask_blocks, roll_shifts = [], [], []
    for g, (d, wg) in enumerate(zip(_DILATIONS, group_weights)):
        for kh in range(3):
            for kw in range(3):
                dh, dw = (kh - 1) * d, (kw - 1) * d
                if abs(dh) >= H or abs(dw) >= W:
                    continue                                   # tap reads only zero padding
                wt = wg[kh, kw].T                              # (c_out_g, n) = [co, ci]
                f = np.zeros((nOut, n), dtype=np.float32)
                if g == 0:                                     # d1 -> channels [0:n1]
                    f[0:n1, :] = wt
                else:                                          # d(2^g) -> add_g .. add_4
                    for b in range(g, 5):
                        f[n1 + (b - 1) * n: n1 + b * n, :] = wt
                w_blocks.append(f)

                valid = ((rr + dh >= 0) & (rr + dh < H) &
                         (cc + dw >= 0) & (cc + dw < W)).reshape(-1).astype(np.float32)
                mask_blocks.append(np.broadcast_to(valid, (n, HW)))
                roll_shifts.append((-(dh * W + dw)) % HW)      # lane-roll amount

    w_fold = jnp.asarray(np.concatenate(w_blocks, axis=1), dtype=compute_dtype)    # (nOut, K)
    masks = jnp.asarray(np.concatenate(mask_blocks, axis=0), dtype=compute_dtype)  # (K, HW)
    return w1t, w_fold, masks, tuple(roll_shifts), n, n1, nOut


def _choose_images_per_step(N, Cin, nOut, n, K, HW, compute_dtype):
    """Largest divisor of N whose working set fits comfortably in VMEM while
    keeping >= 2 grid steps (so the batch axis can split across v7x megacore)."""
    it = jnp.dtype(compute_dtype).itemsize
    # per-image: double-buffered x & out blocks (f32) + f32 acc + patch temporaries
    per_img = HW * (2 * Cin * 4 + 2 * nOut * 4 + nOut * 4 + (2 * K + n) * it)
    shared = 4 * n * Cin + it * nOut * K + it * K * HW          # weights + mask
    budget = 24 * 1024 * 1024
    nb = 1
    for cand in range(1, N + 1):
        if N % cand != 0:
            continue
        if shared + cand * per_img > budget:
            continue
        if N >= 2 and (N // cand) < 2:
            continue
        nb = cand
    return nb


def esp_block_nchw(x_nchw, wc1, wd1, wds, *, compute_dtype=jnp.float32,
                   images_per_step=None):
    """Fused ESP block.  x_nchw: (N, Cin, H, W) float32 (PyTorch layout).

    wc1: (Cin, n) 1x1-conv weight;  wd1: (3,3,n,n1) HWIO;  wds: (4,3,3,n,n) HWIO
    for dilations 2,4,8,16.  On v6e/v7x, compute_dtype=jnp.bfloat16 halves the
    matmul-operand traffic (accumulation stays f32, residual add stays f32).
    """
    N, Cin, H, W = x_nchw.shape
    HW = H * W
    w1t, w_fold, masks, roll_shifts, n, n1, nOut = _fold_params(
        wc1, wd1, wds, H, W, compute_dtype)
    assert Cin == nOut, "residual add (add=True) requires nIn == nOut"
    K = w_fold.shape[1]

    if images_per_step is None:
        images_per_step = _choose_images_per_step(N, Cin, nOut, n, K, HW, compute_dtype)
    NB = images_per_step
    assert N % NB == 0, "images_per_step must divide the batch size"

    x3 = x_nchw.reshape(N, Cin, HW)              # free reshape, no transpose
    kernel = functools.partial(_esp_kernel, nb=NB, roll_shifts=roll_shifts,
                               compute_dtype=compute_dtype)

    out3 = pl.pallas_call(
        kernel,
        out_shape=jax.ShapeDtypeStruct((N, nOut, HW), jnp.float32),
        grid_spec=pltpu.PrefetchScalarGridSpec(
            num_scalar_prefetch=0,
            grid=(N // NB,),
            in_specs=[
                pl.BlockSpec((NB, Cin, HW), lambda b: (b, 0, 0)),
                pl.BlockSpec((n, Cin), lambda b: (0, 0)),      # constant block -> fetched once
                pl.BlockSpec((nOut, K), lambda b: (0, 0)),     # constant block -> fetched once
                pl.BlockSpec((K, HW), lambda b: (0, 0)),       # constant block -> fetched once
            ],
            out_specs=pl.BlockSpec((NB, nOut, HW), lambda b: (b, 0, 0)),
        ),
        compiler_params=pltpu.CompilerParams(
            dimension_semantics=("parallel",),
            vmem_limit_bytes=32 * 1024 * 1024,
        ),
    )(x3, w1t, w_fold, masks)
    return out3.reshape(N, nOut, H, W)


# ----------------------- pure-JAX reference (for sanity check) -----------------------
def _ref_forward_nchw(x_nchw, wc1, wd1, wds):
    x = jnp.transpose(x_nchw, (0, 2, 3, 1))              # NHWC
    out1 = jnp.einsum('nhwc,co->nhwo', x, wc1)

    def dconv(inp, w, d):
        return jax.lax.conv_general_dilated(
            inp, w, window_strides=(1, 1),
            padding=[(d, d), (d, d)], rhs_dilation=(d, d),
            dimension_numbers=('NHWC', 'HWIO', 'NHWC'))

    d1 = dconv(out1, wd1, 1)
    d2 = dconv(out1, wds[0], 2)
    d4 = dconv(out1, wds[1], 4)
    d8 = dconv(out1, wds[2], 8)
    d16 = dconv(out1, wds[3], 16)
    add1 = d2
    add2 = add1 + d4
    add3 = add2 + d8
    add4 = add3 + d16
    combine = jnp.concatenate([d1, add1, add2, add3, add4], axis=-1)
    combine = combine + x
    return jnp.transpose(combine, (0, 3, 1, 2))


if __name__ == "__main__":
    # Small shapes: nIn = nOut = 20 -> n = 4, n1 = 20 - 4*4 = 4
    N, nIn, H, W = 2, 20, 16, 16
    nOut = nIn
    n = nOut // 5
    n1 = nOut - 4 * n

    key = jax.random.PRNGKey(0)
    kx, k0, k1, k2 = jax.random.split(key, 4)

    x = jax.random.normal(kx, (N, nIn, H, W), dtype=jnp.float32)          # NCHW like PyTorch
    wc1 = 0.2 * jax.random.normal(k0, (nIn, n), dtype=jnp.float32)        # 1x1 conv (Cin, Cout)
    wd1 = 0.2 * jax.random.normal(k1, (3, 3, n, n1), dtype=jnp.float32)   # HWIO, d=1
    wds = 0.2 * jax.random.normal(k2, (4, 3, 3, n, n), dtype=jnp.float32) # d=2,4,8,16 stacked

    out = esp_block_nchw(x, wc1, wd1, wds)
    out = jax.block_until_ready(out)

    ref = _ref_forward_nchw(x, wc1, wd1, wds)
    err = float(jnp.max(jnp.abs(out - ref)))
    scale = float(jnp.max(jnp.abs(ref))) + 1.0
    assert out.shape == (N, nOut, H, W)
    assert err < 1e-2 * scale, f"max abs error too large: {err}"

    print("KERNEL_OK")
</pallas_src>

<mosaic_0001>
module attributes {stable_mosaic.version = 11 : i64} {
  func.func @_esp_kernel(%arg0: i32, %arg1: memref<1x20x256xf32, #tpu.memory_space<vmem>>, %arg2: memref<4x20xf32, #tpu.memory_space<vmem>>, %arg3: memref<20x148xf32, #tpu.memory_space<vmem>>, %arg4: memref<148x256xf32, #tpu.memory_space<vmem>>, %arg5: memref<1x20x256xf32, #tpu.memory_space<vmem>>) attributes {dimension_semantics = [#tpu.dimension_semantics<parallel>], iteration_bounds = array<i64: 2>, scalar_prefetch = 0 : i64, scratch_operands = 0 : i64, tpu.core_type = #tpu.core_type<tc>, window_params = [{transform_indices = @transform_0, window_bounds = array<i64: 1, 20, 256>}, {pipeline_mode = #tpu.pipeline_mode<synchronous>, transform_indices = @transform_1, window_bounds = array<i64: 4, 20>}, {pipeline_mode = #tpu.pipeline_mode<synchronous>, transform_indices = @transform_2, window_bounds = array<i64: 20, 148>}, {pipeline_mode = #tpu.pipeline_mode<synchronous>, transform_indices = @transform_3, window_bounds = array<i64: 148, 256>}, {transform_indices = @transform_4, window_bounds = array<i64: 1, 20, 256>}]} {
    %c0 = arith.constant 0 : index
    %c0_0 = arith.constant 0 : index
    %0 = vector.load %arg2[%c0, %c0_0] : memref<4x20xf32, #tpu.memory_space<vmem>>, vector<4x20xf32>
    %c0_1 = arith.constant 0 : index
    %c0_2 = arith.constant 0 : index
    %1 = vector.load %arg3[%c0_1, %c0_2] : memref<20x148xf32, #tpu.memory_space<vmem>>, vector<20x148xf32>
    %c0_3 = arith.constant 0 : index
    %c0_4 = arith.constant 0 : index
    %2 = vector.load %arg4[%c0_3, %c0_4] : memref<148x256xf32, #tpu.memory_space<vmem>>, vector<148x256xf32>
    %c0_5 = arith.constant 0 : index
    %c0_6 = arith.constant 0 : index
    %c0_7 = arith.constant 0 : index
    %3 = vector.load %arg1[%c0_5, %c0_6, %c0_7] : memref<1x20x256xf32, #tpu.memory_space<vmem>>, vector<1x20x256xf32>
    %4 = vector.shape_cast %3 : vector<1x20x256xf32> to vector<20x256xf32>
    %cst = arith.constant dense<0.000000e+00> : vector<4x256xf32>
    %5 = tpu.matmul %0, %4, %cst {dimension_numbers = #tpu.dot_dimension_numbers<[1], [0], [0], [1], [0, 0, 1, 1], [], []>} : vector<4x20xf32>, vector<20x256xf32>, vector<4x256xf32> -> vector<4x256xf32>
    %c17_i32 = arith.constant 17 : i32
    %6 = tpu.dynamic_rotate %5 by %c17_i32 dim 1 : vector<4x256xf32>, i32 -> vector<4x256xf32>
    %c16_i32 = arith.constant 16 : i32
    %7 = tpu.dynamic_rotate %5 by %c16_i32 dim 1 : vector<4x256xf32>, i32 -> vector<4x256xf32>
    %c15_i32 = arith.constant 15 : i32
    %8 = tpu.dynamic_rotate %5 by %c15_i32 dim 1 : vector<4x256xf32>, i32 -> vector<4x256xf32>
    %c1_i32 = arith.constant 1 : i32
    %9 = tpu.dynamic_rotate %5 by %c1_i32 dim 1 : vector<4x256xf32>, i32 -> vector<4x256xf32>
    %c255_i32 = arith.constant 255 : i32
    %10 = tpu.dynamic_rotate %5 by %c255_i32 dim 1 : vector<4x256xf32>, i32 -> vector<4x256xf32>
    %c241_i32 = arith.constant 241 : i32
    %11 = tpu.dynamic_rotate %5 by %c241_i32 dim 1 : vector<4x256xf32>, i32 -> vector<4x256xf32>
    %c240_i32 = arith.constant 240 : i32
    %12 = tpu.dynamic_rotate %5 by %c240_i32 dim 1 : vector<4x256xf32>, i32 -> vector<4x256xf32>
    %c239_i32 = arith.constant 239 : i32
    %13 = tpu.dynamic_rotate %5 by %c239_i32 dim 1 : vector<4x256xf32>, i32 -> vector<4x256xf32>
    %c34_i32 = arith.constant 34 : i32
    %14 = tpu.dynamic_rotate %5 by %c34_i32 dim 1 : vector<4x256xf32>, i32 -> vector<4x256xf32>
    %c32_i32 = arith.constant 32 : i32
    %15 = tpu.dynamic_rotate %5 by %c32_i32 dim 1 : vector<4x256xf32>, i32 -> vector<4x256xf32>
    %c30_i32 = arith.constant 30 : i32
    %16 = tpu.dynamic_rotate %5 by %c30_i32 dim 1 : vector<4x256xf32>, i32 -> vector<4x256xf32>
    %c2_i32 = arith.constant 2 : i32
    %17 = tpu.dynamic_rotate %5 by %c2_i32 dim 1 : vector<4x256xf32>, i32 -> vector<4x256xf32>
    %c254_i32 = arith.constant 254 : i32
    %18 = tpu.dynamic_rotate %5 by %c254_i32 dim 1 : vector<4x256xf32>, i32 -> vector<4x256xf32>
    %c226_i32 = arith.constant 226 : i32
    %19 = tpu.dynamic_rotate %5 by %c226_i32 dim 1 : vector<4x256xf32>, i32 -> vector<4x256xf32>
    %c224_i32 = arith.constant 224 : i32
    %20 = tpu.dynamic_rotate %5 by %c224_i32 dim 1 : vector<4x256xf32>, i32 -> vector<4x256xf32>
    %c222_i32 = arith.constant 222 : i32
    %21 = tpu.dynamic_rotate %5 by %c222_i32 dim 1 : vector<4x256xf32>, i32 -> vector<4x256xf32>
    %c68_i32 = arith.constant 68 : i32
    %22 = tpu.dynamic_rotate %5 by %c68_i32 dim 1 : vector<4x256xf32>, i32 -> vector<4x256xf32>
    %c64_i32 = arith.constant 64 : i32
    %23 = tpu.dynamic_rotate %5 by %c64_i32 dim 1 : vector<4x256xf32>, i32 -> vector<4x256xf32>
    %c60_i32 = arith.constant 60 : i32
    %24 = tpu.dynamic_rotate %5 by %c60_i32 dim 1 : vector<4x256xf32>, i32 -> vector<4x256xf32>
    %c4_i32 = arith.constant 4 : i32
    %25 = tpu.dynamic_rotate %5 by %c4_i32 dim 1 : vector<4x256xf32>, i32 -> vector<4x256xf32>
    %c252_i32 = arith.constant 252 : i32
    %26 = tpu.dynamic_rotate %5 by %c252_i32 dim 1 : vector<4x256xf32>, i32 -> vector<4x256xf32>
    %c196_i32 = arith.constant 196 : i32
    %27 = tpu.dynamic_rotate %5 by %c196_i32 dim 1 : vector<4x256xf32>, i32 -> vector<4x256xf32>
    %c192_i32 = arith.constant 192 : i32
    %28 = tpu.dynamic_rotate %5 by %c192_i32 dim 1 : vector<4x256xf32>, i32 -> vector<4x256xf32>
    %c188_i32 = arith.constant 188 : i32
    %29 = tpu.dynamic_rotate %5 by %c188_i32 dim 1 : vector<4x256xf32>, i32 -> vector<4x256xf32>
    %c136_i32 = arith.constant 136 : i32
    %30 = tpu.dynamic_rotate %5 by %c136_i32 dim 1 : vector<4x256xf32>, i32 -> vector<4x256xf32>
    %c128_i32 = arith.constant 128 : i32
    %31 = tpu.dynamic_rotate %5 by %c128_i32 dim 1 : vector<4x256xf32>, i32 -> vector<4x256xf32>
    %c120_i32 = arith.constant 120 : i32
    %32 = tpu.dynamic_rotate %5 by %c120_i32 dim 1 : vector<4x256xf32>, i32 -> vector<4x256xf32>
    %c8_i32 = arith.constant 8 : i32
    %33 = tpu.dynamic_rotate %5 by %c8_i32 dim 1 : vector<4x256xf32>, i32 -> vector<4x256xf32>
    %c248_i32 = arith.constant 248 : i32
    %34 = tpu.dynamic_rotate %5 by %c248_i32 dim 1 : vector<4x256xf32>, i32 -> vector<4x256xf32>
    %c136_i32_8 = arith.constant 136 : i32
    %35 = tpu.dynamic_rotate %5 by %c136_i32_8 dim 1 : vector<4x256xf32>, i32 -> vector<4x256xf32>
    %c128_i32_9 = arith.constant 128 : i32
    %36 = tpu.dynamic_rotate %5 by %c128_i32_9 dim 1 : vector<4x256xf32>, i32 -> vector<4x256xf32>
    %c120_i32_10 = arith.constant 120 : i32
    %37 = tpu.dynamic_rotate %5 by %c120_i32_10 dim 1 : vector<4x256xf32>, i32 -> vector<4x256xf32>
    %38 = tpu.concatenate %6, %7, %8, %9, %5, %10, %11, %12, %13, %14, %15, %16, %17, %5, %18, %19 in 0 : vector<4x256xf32>, vector<4x256xf32>, vector<4x256xf32>, vector<4x256xf32>, vector<4x256xf32>, vector<4x256xf32>, vector<4x256xf32>, vector<4x256xf32>, vector<4x256xf32>, vector<4x256xf32>, vector<4x256xf32>, vector<4x256xf32>, vector<4x256xf32>, vector<4x256xf32>, vector<4x256xf32>, vector<4x256xf32> -> vector<64x256xf32>
    %39 = tpu.concatenate %20, %21, %22, %23, %24, %25, %5, %26, %27, %28, %29, %30, %31, %32, %33, %5 in 0 : vector<4x256xf32>, vector<4x256xf32>, vector<4x256xf32>, vector<4x256xf32>, vector<4x256xf32>, vector<4x256xf32>, vector<4x256xf32>, vector<4x256xf32>, vector<4x256xf32>, vector<4x256xf32>, vector<4x256xf32>, vector<4x256xf32>, vector<4x256xf32>, vector<4x256xf32>, vector<4x256xf32>, vector<4x256xf32> -> vector<64x256xf32>
    %40 = tpu.concatenate %34, %35, %36, %37, %5 in 0 : vector<4x256xf32>, vector<4x256xf32>, vector<4x256xf32>, vector<4x256xf32>, vector<4x256xf32> -> vector<20x256xf32>
    %41 = tpu.concatenate %38, %39, %40 in 0 : vector<64x256xf32>, vector<64x256xf32>, vector<20x256xf32> -> vector<148x256xf32>
    %42 = arith.mulf %41, %2 : vector<148x256xf32>
    %cst_11 = arith.constant dense<0.000000e+00> : vector<20x256xf32>
    %43 = tpu.matmul %1, %42, %cst_11 {dimension_numbers = #tpu.dot_dimension_numbers<[1], [0], [0], [1], [0, 0, 1, 1], [], []>} : vector<20x148xf32>, vector<148x256xf32>, vector<20x256xf32> -> vector<20x256xf32>
    %44 = arith.addf %43, %4 : vector<20x256xf32>
    %c0_12 = arith.constant 0 : index
    %c0_13 = arith.constant 0 : index
    %c0_14 = arith.constant 0 : index
    %45 = vector.load %arg5[%c0_12, %c0_13, %c0_14] : memref<1x20x256xf32, #tpu.memory_space<vmem>>, vector<1x20x256xf32>
    %46 = vector.shape_cast %45 : vector<1x20x256xf32> to vector<20x256xf32>
    %47 = vector.shape_cast %44 : vector<20x256xf32> to vector<1x20x256xf32>
    tpu.vector_store %arg5[%c0_12, %c0_13, %c0_14], %47 {strides = array<i32>} : memref<1x20x256xf32, #tpu.memory_space<vmem>>, vector<1x20x256xf32>,
    return
  }
  func.func @transform_0(%arg0: i32) -> (i32, i32, i32) {
    %c0_i32 = arith.constant 0 : i32
    %c0_i32_0 = arith.constant 0 : i32
    %c0_i32_1 = arith.constant 0 : i32
    return %arg0, %c0_i32, %c0_i32_0 : i32, i32, i32
  }
  func.func @transform_1(%arg0: i32) -> (i32, i32) {
    %c0_i32 = arith.constant 0 : i32
    %c0_i32_0 = arith.constant 0 : i32
    %c0_i32_1 = arith.constant 0 : i32
    return %c0_i32, %c0_i32_0 : i32, i32
  }
  func.func @transform_2(%arg0: i32) -> (i32, i32) {
    %c0_i32 = arith.constant 0 : i32
    %c0_i32_0 = arith.constant 0 : i32
    %c0_i32_1 = arith.constant 0 : i32
    return %c0_i32, %c0_i32_0 : i32, i32
  }
  func.func @transform_3(%arg0: i32) -> (i32, i32) {
    %c0_i32 = arith.constant 0 : i32
    %c0_i32_0 = arith.constant 0 : i32
    %c0_i32_1 = arith.constant 0 : i32
    return %c0_i32, %c0_i32_0 : i32, i32
  }
  func.func @transform_4(%arg0: i32) -> (i32, i32, i32) {
    %c0_i32 = arith.constant 0 : i32
    %c0_i32_0 = arith.constant 0 : i32
    %c0_i32_1 = arith.constant 0 : i32
    return %arg0, %c0_i32, %c0_i32_0 : i32, i32, i32
  }
}

</mosaic_0001>

<bundles_post_ra>
// kernel: tpu_custom_call.1
= control target key start
LH: loop header
LB: loop body
LE: loop exit
PB: predicated region body
PF: predicated region fallthrough
CT: control target
= control target key end

     0   :  { %9 = vsyncpa [#allocation3], 0  ;;  %s1031_s15 = smov 0   ;;  %s1461_s0 = inlined_call_operand.vmem [shape: f32[2,20,256], index: 0, kind: input, shape index: {}]   ;;  %s1462_s1 = inlined_call_operand.vmem [shape: f32[4,20], index: 1, kind: input, shape index: {}]   ;;  %s1463_s2 = inlined_call_operand.vmem [shape: f32[20,148], index: 2, kind: input, shape index: {}]   ;;  %s1464_s3 = inlined_call_operand.hbm [shape: f32[148,256], index: 3, kind: input, shape index: {}]   ;;  %s1465_s4 = inlined_call_operand.vmem [shape: f32[2,20,256], index: 4, kind: output, shape index: {}]  }
   0x1 LB: > { %s1037_s16 = sadd.s32 4294967295, %s977_s15   ;;  %p836_p0 = scmp.ge.s32.totalorder %s977_s15, 1  ;;  %s977_s15 = sphi %s1031_s15, %s15_s15  }
   0x2   : > { %p135_p1 = scmp.lt.s32.totalorder %s977_s15, 3  ;;  %s979_s17 = smov [#allocation2]  }
   0x3   : > { %s153_s18 = sshll.u32 %s979_s17, 4  ;;  %p1466_p3 = scmp.eq.s32.totalorder %s1037_s16, 0  ;;  %s154_s18 = int_to_ptr.vmem [resolvable:$true] %s153_s18 }
   0x4   : > { %p1041_p2 = pnand %p836_p0, %p135_p1  ;;  %s939_s23 = scalar_lea.hbm %s1464_s3, 4864 }
   0x5   : > { %p940_p6 = scmp.ne.s32.totalorder %s1464_s3, %s939_s23  ;;  %p946_p10 = scmp.lt.u32.totalorder %s939_s23, %s1464_s3 }
   0x6   : > { %s1468_s19 = scalar_select %p1041_p2, 1, 0 }
   0x7   : > { %p898_p4 = pneg %p1041_p2 }
   0x9   : > { %p1050_p5 = pnand %p1466_p3, %p898_p4 }
   0xb   : > { %p941_p7 = pneg %p1050_p5 }
   0xd   : > { %p942_p8 = pnand %p941_p7, %p940_p6 }
   0xf   : > { %p943_p9 = pneg %p942_p8 }
  0x11   : > { %p948_p11 = pnand %p946_p10, %p943_p9 }
  0x13   : > { %951 = shalt.err (!%p948_p11)
}
  0x14   : > { %s952_s28 = scalar_lea.vmem %s154_s18, 4864  ;;  %p960_p1 = scmp.lt.s32.totalorder %s154_s18, %s154_s18 }
  0x15   : > { %p953_p12 = scmp.ne.s32.totalorder %s154_s18, %s952_s28  ;;  %p961_p4 = scmp.lt.s32.totalorder %s952_s28, %s952_s28 }
  0x17   : > { %p955_p13 = pnand %p953_p12, %p941_p7  ;;  %p962_p3 = por %p961_p4, %p960_p1 }
  0x19   : > { %p956_p0 = pneg %p955_p13 }
  0x1b   : > { %p963_p2 = pnand %p962_p3, %p956_p0 }
  0x1d   : > { %966 = shalt.err (!%p963_p2)
}
  0x1e   : > { %s980_s29 = smov 256   ;;  %s981_s30 = smov 16  }
  0x1f   : > { %901 = dma.hbm_to_vmem [thread:$0]  (!%p1050_p5), %s1464_s3, 4864, %s154_s18, [#allocation3], %s980_s29, %s980_s29, %s981_s30  }
  0x20   : > { %p1470_p6 = scmp.ne.s32.totalorder %s1468_s19, 0 }
  0x21   : > { %p1471_p8 = scmp.eq.s32.totalorder (!%p1470_p6), %s1037_s16, 0 }
  0x22   : > { %177 = sbr.rel (%p1470_p6) target bundleno = 714 (0x2ca), region = 36 }
  0x29   : > { %972 = dma.done.wait (%p1471_p8), [#allocation3], 4864   ;;  %p1472_p7 = pmov %p1471_p8 }
  0x2a   : > { %p203_p2 = scmp.lt.s32.totalorder %s1037_s16, 1  ;;  %v982_v0 = vmov 0.0   ;;  %vm268_vm0 = vcmask 1043456   ;;  %v213_v9 = vld [vmem:[%s1462_s1] sm:$0xf]  ;;  %vm264_vm1 = vcmask 162816   ;;  %v350_v33 = vlaneseq }
  0x2b   : > { %974 = vsyncadd (%p1472_p7), [#allocation3], 4294962432  ;;  %339 = vmatprep.mubr.f32.mxu0 %v982_v0  ;;  %s983_s13 = smov 1   ;;  %s984_s14 = smov 16   ;;  %v215_v12 = vld [vmem:[%s1463_s2 + $0x8] sm:$0xff]  ;;  %v227_v57 = vld [vmem:[#allocation2 + $0x38] sm:$0xff] }
  0x2c   : > { %s1474_s16 = smov (!%p203_p2, %s1037_s16), 1  ;;  %s985_s17 = smov 17   ;;  %848 = vmatprep.mubr.msk.f32.mxu1 %vm264_vm1, %v215_v12  ;;  %v1190_v36 = vand.u32 127, %v350_v33  ;;  %v225_v0 = vld [vmem:[#allocation2 + $0x28] sm:$0xff] }
  0x2d   : > { %s893_s7 = smul.u32 48, %s1474_s16  ;;  %s986_s18 = smov 15  }
  0x2e   : > { %s987_s19 = smov 127   ;;  %s988_s20 = smov 112   ;;  %vm380_vm2 = vcmp.lt.s32.totalorder %v1190_v36, 127  ;;  %vm394_vm3 = vcmp.lt.s32.totalorder %v1190_v36, 112  ;;  %vm387_vm4 = vcmp.lt.s32.totalorder %v1190_v36, 113  ;;  %vm373_vm5 = vcmp.lt.s32.totalorder %v1190_v36, 1 }
  0x2f   : > { %s207_s10 = scalar_lea.vmem %s1461_s0, %s893_s7  ;;  %s989_s21 = smov 113   ;;  %vm352_vm6 = vcmp.lt.s32.totalorder %v1190_v36, 17  ;;  %vm366_vm7 = vcmp.lt.s32.totalorder %v1190_v36, 15  ;;  %vm408_vm8 = vcmp.lt.s32.totalorder %v1190_v36, 34  ;;  %vm422_vm9 = vcmp.lt.s32.totalorder %v1190_v36, 30 }
  0x30   : > { %v1086_v1 = vld [vmem:[%s207_s10 + $0x8] sm:$0xff]  ;;  %v1088_v2 = vld [vmem:[%s207_s10 + $0x18] sm:$0xff]  ;;  %v1090_v3 = vld [vmem:[%s207_s10] sm:$0xff]  ;;  %s990_s22 = smov 34   ;;  %s991_s23 = smov 30   ;;  %vm401_vm10 = vcmp.lt.s32.totalorder %v1190_v36, 111 }
  0x31   : > { %v853_v4 = vpack.c.bf16 %v1088_v2, %v1086_v1  ;;  %v1094_v5 = vld [vmem:[%s207_s10 + $0x10] sm:$0xff]  ;;  %v1098_v7 = vld [vmem:[%s207_s10 + $0x28] sm:$0xf]  ;;  %v1102_v8 = vld [vmem:[%s207_s10 + $0x20] sm:$0xf]  ;;  %s992_s24 = smov 111  }
  0x32   : > { %v855_v6 = vpack.c.bf16 %v1094_v5, %v1090_v3  ;;  %s993_s25 = smov 32   ;;  %s994_s26 = smov 98   ;;  %vm415_vm11 = vcmp.lt.s32.totalorder %v1190_v36, 32  ;;  %vm443_vm12 = vcmp.lt.s32.totalorder %v1190_v36, 98  ;;  %vm429_vm13 = vcmp.lt.s32.totalorder %v1190_v36, 2 }
  0x33   : > { %854 = vmatprep.subr.bf16.mxu0 %v853_v4  ;;  %s995_s27 = smov 2   ;;  %s996_s28 = smov 126   ;;  %vm436_vm14 = vcmp.lt.s32.totalorder %v1190_v36, 126  ;;  %vm471_vm15 = vcmp.lt.s32.totalorder %v1190_v36, 64 }
  0x34   : > { %856 = vmatpush1.bf16.msra.mxu0 %v855_v6  ;;  %s997_s29 = smov 94   ;;  %s998_s30 = smov 64  }
  0x35   : > { %843 = vmatprep.subr.msk.mxu0 %vm268_vm0, %v1098_v7  ;;  %s999_s5 = smov 96   ;;  %s1000_s6 = smov 68  }
  0x36   : > { %s1001_s8 = smov 4   ;;  %s1002_s9 = smov 124  }
  0x37   : > { %s1003_s10 = smov 60   ;;  %s1004_s11 = smov 8  }
  0x38   : > { %844 = vmatpush1.msk.msra.mxu0 %vm268_vm0, %v1102_v8  ;;  %s1005_s12 = smov 120  }
  0x39   : > { %845 = vmatmul.mubr.msk.f32.vlgmr.msra.gmra.mrb[0].mxu0 %vm264_vm1, %v213_v9 }
 0x10c   : > { %v1110_v10 = vpop.f32.mrb[0].mxu0 }
 0x10d   : > { %369 = vrot.lane.b32.xlu1 %v1110_v10, %s983_s13  ;;  %355 = vrot.lane.b32.xlu0 %v1110_v10, %s984_s14  ;;  %v1115_v11 = vpop.f32.mrb[1].mxu0  ;;  %v547_v45 = vrot.slane %v1110_v10, 4 }
 0x10e   : > { %v548_v51 = vrot.slane %v1115_v11, 4 }
 0x111   : > { %346 = vrot.lane.b32.xlu0 %v1110_v10, %s985_s17  ;;  %371 = vrot.lane.b32.xlu1 %v1115_v11, %s983_s13 }
 0x115   : > { %362 = vrot.lane.b32.xlu0 %v1110_v10, %s986_s18  ;;  %348 = vrot.lane.b32.xlu1 %v1115_v11, %s985_s17 }
 0x119   : > { %376 = vrot.lane.b32.xlu0 %v1110_v10, %s987_s19  ;;  %364 = vrot.lane.b32.xlu1 %v1115_v11, %s986_s18 }
 0x11d   : > { %390 = vrot.lane.b32.xlu0 %v1110_v10, %s988_s20  ;;  %378 = vrot.lane.b32.xlu1 %v1115_v11, %s987_s19 }
 0x121   : > { %383 = vrot.lane.b32.xlu0 %v1110_v10, %s989_s21  ;;  %392 = vrot.lane.b32.xlu1 %v1115_v11, %s988_s20 }
 0x125   : > { %404 = vrot.lane.b32.xlu0 %v1110_v10, %s990_s22  ;;  %385 = vrot.lane.b32.xlu1 %v1115_v11, %s989_s21 }
 0x129   : > { %418 = vrot.lane.b32.xlu0 %v1110_v10, %s991_s23  ;;  %406 = vrot.lane.b32.xlu1 %v1115_v11, %s990_s22 }
 0x12d   : > { %397 = vrot.lane.b32.xlu0 %v1110_v10, %s992_s24  ;;  %420 = vrot.lane.b32.xlu1 %v1115_v11, %s991_s23 }
 0x131   : > { %411 = vrot.lane.b32.xlu0 %v1110_v10, %s993_s25  ;;  %399 = vrot.lane.b32.xlu1 %v1115_v11, %s992_s24 }
 0x135   : > { %439 = vrot.lane.b32.xlu0 %v1110_v10, %s994_s26  ;;  %413 = vrot.lane.b32.xlu1 %v1115_v11, %s993_s25 }
 0x139   : > { %425 = vrot.lane.b32.xlu0 %v1110_v10, %s995_s27  ;;  %441 = vrot.lane.b32.xlu1 %v1115_v11, %s994_s26 }
 0x13d   : > { %432 = vrot.lane.b32.xlu0 %v1110_v10, %s996_s28  ;;  %427 = vrot.lane.b32.xlu1 %v1115_v11, %s995_s27 }
 0x141   : > { %453 = vrot.lane.b32.xlu0 %v1110_v10, %s997_s29  ;;  %434 = vrot.lane.b32.xlu1 %v1115_v11, %s996_s28 }
 0x145   : > { %467 = vrot.lane.b32.xlu0 %v1110_v10, %s998_s30  ;;  %455 = vrot.lane.b32.xlu1 %v1115_v11, %s997_s29  ;;  %s212_s29 = scalar_lea.vmem %s1465_s4, %s893_s7 }
 0x149   : > { %469 = vrot.lane.b32.xlu1 %v1115_v11, %s998_s30  ;;  %357 = vrot.lane.b32.xlu0 %v1115_v11, %s984_s14 }
 0x14d   : > { %448 = vrot.lane.b32.xlu1 %v1115_v11, %s999_s5  ;;  %446 = vrot.lane.b32.xlu0 %v1110_v10, %s999_s5 }
 0x151   : > { %462 = vrot.lane.b32.xlu1 %v1115_v11, %s1000_s6  ;;  %460 = vrot.lane.b32.xlu0 %v1110_v10, %s1000_s6 }
 0x155   : > { %483 = vrot.lane.b32.xlu1 %v1115_v11, %s1001_s8  ;;  %481 = vrot.lane.b32.xlu0 %v1110_v10, %s1001_s8 }
 0x159   : > { %490 = vrot.lane.b32.xlu1 %v1115_v11, %s1002_s9  ;;  %488 = vrot.lane.b32.xlu0 %v1110_v10, %s1002_s9 }
 0x15d   : > { %476 = vrot.lane.b32.xlu1 %v1115_v11, %s1003_s10  ;;  %474 = vrot.lane.b32.xlu0 %v1110_v10, %s1003_s10 }
 0x161   : > { %497 = vrot.lane.b32.xlu1 %v1115_v11, %s1004_s11  ;;  %495 = vrot.lane.b32.xlu0 %v1110_v10, %s1004_s11 }
 0x165   : > { %504 = vrot.lane.b32.xlu1 %v1115_v11, %s1005_s12  ;;  %502 = vrot.lane.b32.xlu0 %v1110_v10, %s1005_s12 }
 0x17f   : > { %v370_v13 = vpop.permute.xlu1 %369  ;;  %v1166_v14 = vpop.permute.xlu0 %355 }
 0x183   : > { %v1168_v15 = vpop.permute.xlu0 %346  ;;  %v372_v16 = vpop.permute.xlu1 %371 }
 0x184   : > { %v374_v46 = vsel %vm373_vm5, %v370_v13, %v372_v16  ;;  %v375_v47 = vsel %vm373_vm5, %v372_v16, %v370_v13  ;;  %v223_v13 = vld [vmem:[#allocation2 + $0x18] sm:$0xff]  ;;  %vm450_vm5 = vcmp.lt.s32.totalorder %v1190_v36, 96 }
 0x185   : > { %v517_v59 = vrot.slane %v375_v47, 4  ;;  %v518_v60 = vrot.slane %v374_v46, 4 }
 0x187   : > { %v363_v17 = vpop.permute.xlu0 %362  ;;  %v1170_v18 = vpop.permute.xlu1 %348 }
 0x188   : > { %v354_v33 = vsel %vm352_vm6, %v1170_v18, %v1168_v15 }
 0x18b   : > { %v377_v19 = vpop.permute.xlu0 %376  ;;  %v365_v20 = vpop.permute.xlu1 %364 }
 0x18c   : > { %v367_v54 = vsel %vm366_vm7, %v363_v17, %v365_v20  ;;  %v368_v55 = vsel %vm366_vm7, %v365_v20, %v363_v17  ;;  %v222_v17 = vld [vmem:[#allocation2 + $0x10] sm:$0xff]  ;;  %vm492_vm7 = vcmp.lt.s32.totalorder %v1190_v36, 124 }
 0x18d   : > { %v559_v4 = vsel %vm268_vm0, %v368_v55, %v517_v59  ;;  %v560_v16 = vsel %vm268_vm0, %v367_v54, %v518_v60  ;;  %v226_v20 = vld [vmem:[#allocation2 + $0x30] sm:$0xff] }
 0x18f   : > { %v391_v21 = vpop.permute.xlu0 %390  ;;  %v379_v22 = vpop.permute.xlu1 %378 }
 0x190   : > { %v382_v39 = vsel %vm380_vm2, %v379_v22, %v377_v19  ;;  %v381_v43 = vsel %vm380_vm2, %v377_v19, %v379_v22  ;;  %v224_v22 = vld [vmem:[#allocation2 + $0x20] sm:$0xff]  ;;  %vm359_vm2 = vcmp.lt.s32.totalorder %v1190_v36, 16 }
 0x191   : > { %v524_v48 = vrot.slane %v382_v39, 4  ;;  %v523_v56 = vrot.slane %v381_v43, 4  ;;  %v1262_v43 = vmul.f32 %v559_v4, %v222_v17  ;;  %v229_v17 = vld [vmem:[#allocation2 + $0x48] sm:$0xff] }
 0x193   : > { %v384_v23 = vpop.permute.xlu0 %383  ;;  %v393_v24 = vpop.permute.xlu1 %392  ;;  %v562_v62 = vsel %vm268_vm0, %v1115_v11, %v524_v48  ;;  %v561_v19 = vsel %vm268_vm0, %v1110_v10, %v523_v56 }
 0x194   : > { %v396_v40 = vsel %vm394_vm3, %v393_v24, %v391_v21  ;;  %v395_v50 = vsel %vm394_vm3, %v391_v21, %v393_v24  ;;  %vm464_vm3 = vcmp.lt.s32.totalorder %v1190_v36, 68  ;;  %v1275_v48 = vmul.f32 %v561_v19, %v224_v22 }
 0x195   : > { %v530_v49 = vrot.slane %v396_v40, 4  ;;  %v529_v63 = vrot.slane %v395_v50, 4  ;;  %v628_v40 = vmul.f32 %v560_v16, %v223_v13  ;;  %v228_v16 = vld [vmem:[#allocation2 + $0x40] sm:$0xff] }
 0x197   : > { %v1172_v25 = vpop.permute.xlu0 %404  ;;  %v386_v26 = vpop.permute.xlu1 %385 }
 0x198   : > { %v389_v44 = vsel %vm387_vm4, %v386_v26, %v384_v23  ;;  %v388_v61 = vsel %vm387_vm4, %v384_v23, %v386_v26  ;;  %v353_v23 = vsel %vm352_vm6, %v1168_v15, %v1170_v18  ;;  %v1251_v26 = vmul.f32 %v562_v62, %v225_v0 }
 0x199   : > { %v564_v58 = vsel %vm268_vm0, %v389_v44, %v530_v49  ;;  %v563_v21 = vsel %vm268_vm0, %v388_v61, %v529_v63  ;;  %vm457_vm4 = vcmp.lt.s32.totalorder %v1190_v36, 94  ;;  %vm485_vm6 = vcmp.lt.s32.totalorder %v1190_v36, 4 }
 0x19a   : > { %v1229_v6 = vmul.f32 %v564_v58, %v227_v57  ;;  %v1264_v44 = vmul.f32 %v563_v21, %v226_v20  ;;  %v221_v58 = vld [vmem:[#allocation2 + $0x8] sm:$0xff] }
 0x19b   : > { %v1174_v27 = vpop.permute.xlu0 %418  ;;  %v1176_v28 = vpop.permute.xlu1 %406 }
 0x19c   : > { %v410_v24 = vsel %vm408_vm8, %v1176_v28, %v1172_v25  ;;  %v409_v46 = vsel %vm408_vm8, %v1172_v25, %v1176_v28  ;;  %v861_v47 = vpack.c.bf16 %v1229_v6, %v1251_v26  ;;  %vm478_vm8 = vcmp.lt.s32.totalorder %v1190_v36, 60 }
 0x19d   : > { %v535_v49 = vrot.slane %v410_v24, 4  ;;  %v536_v61 = vrot.slane %v409_v46, 4 }
 0x19f   : > { %v1178_v29 = vpop.permute.xlu0 %397  ;;  %v1180_v30 = vpop.permute.xlu1 %420 }
 0x1a0   : > { %v423_v39 = vsel %vm422_vm9, %v1174_v27, %v1180_v30  ;;  %v424_v50 = vsel %vm422_vm9, %v1180_v30, %v1174_v27  ;;  %v220_v27 = vld [vmem:[#allocation2] sm:$0xff]  ;;  %vm499_vm9 = vcmp.lt.s32.totalorder %v1190_v36, 8 }
 0x1a1   : > { %v542_v54 = vrot.slane %v423_v39, 4  ;;  %v541_v62 = vrot.slane %v424_v50, 4 }
 0x1a3   : > { %v1182_v31 = vpop.permute.xlu0 %411  ;;  %v1184_v32 = vpop.permute.xlu1 %399 }
 0x1a4   : > { %v402_v30 = vsel %vm401_vm10, %v1178_v29, %v1184_v32 }
 0x1a5   : > { %v565_v19 = vsel %vm268_vm0, %v402_v30, %v535_v49  ;;  %v234_v30 = vld [vmem:[#allocation2 + $0x70] sm:$0xff] }
 0x1a7   : > { %v1186_v34 = vpop.permute.xlu0 %439  ;;  %v1188_v35 = vpop.permute.xlu1 %413 }
 0x1a8   : > { %v416_v55 = vsel %vm415_vm11, %v1182_v31, %v1188_v35  ;;  %v417_v59 = vsel %vm415_vm11, %v1188_v35, %v1182_v31 }
 0x1a9   : > { %v568_v6 = vsel %vm268_vm0, %v416_v55, %v542_v54  ;;  %v567_v21 = vsel %vm268_vm0, %v417_v59, %v541_v62 }
 0x1ab   : > { %v1192_v37 = vpop.permute.xlu0 %425  ;;  %v1194_v38 = vpop.permute.xlu1 %441 }
 0x1ac   : > { %v445_v60 = vsel %vm443_vm12, %v1194_v38, %v1186_v34  ;;  %v444_v24 = vsel %vm443_vm12, %v1186_v34, %v1194_v38  ;;  %v863_v34 = vpack.c.bf16 %v1264_v44, %v1275_v48  ;;  %v633_v38 = vmul.f32 %v565_v19, %v228_v16  ;;  %v237_v16 = vld [vmem:[#allocation2 + $0x88] sm:$0xff] }
 0x1ad   : > { %v554_v22 = vrot.slane %v445_v60, 4 }
 0x1af   : > { %v1202_v41 = vpop.permute.xlu0 %432  ;;  %v1204_v42 = vpop.permute.xlu1 %427 }
 0x1b0   : > { %v430_v26 = vsel %vm429_vm13, %v1192_v37, %v1204_v42 }
 0x1b1   : > { %v570_v44 = vsel %vm268_vm0, %v430_v26, %v548_v51 }
 0x1b3   : > { %v1216_v52 = vpop.permute.xlu0 %453  ;;  %v1218_v53 = vpop.permute.xlu1 %434 }
 0x1b4   : > { %v438_v31 = vsel %vm436_vm14, %v1218_v53, %v1202_v41 }
 0x1b5   : > { %v572_v49 = vsel %vm268_vm0, %v438_v31, %v554_v22 }
 0x1b7   : > { %v1232_v9 = vpop.permute.xlu0 %467  ;;  %v1234_v12 = vpop.permute.xlu1 %455 }
 0x1b8   : > { %v458_v59 = vsel %vm457_vm4, %v1216_v52, %v1234_v12 }
 0x1bb   : > { %v1271_v15 = vpop.permute.xlu1 %469  ;;  %v358_v18 = vpop.permute.xlu0 %357 }
 0x1bc   : > { %v360_v25 = vsel %vm359_vm2, %v1166_v14, %v358_v18  ;;  %v361_v28 = vsel %vm359_vm2, %v358_v18, %v1166_v14  ;;  %v403_v14 = vsel %vm401_vm10, %v1184_v32, %v1178_v29  ;;  %v231_v32 = vld [vmem:[#allocation2 + $0x58] sm:$0xff]  ;;  %v472_v50 = vsel %vm471_vm15, %v1232_v9, %v1271_v15 }
 0x1bd   : > { %v511_v56 = vrot.slane %v361_v28, 4  ;;  %v512_v57 = vrot.slane %v360_v25, 4  ;;  %v566_v20 = vsel %vm268_vm0, %v403_v14, %v536_v61  ;;  %v636_v46 = vmul.f32 %v568_v6, %v231_v32  ;;  %v235_v18 = vld [vmem:[#allocation2 + $0x78] sm:$0xff] }
 0x1be   : > { %v634_v54 = vmul.f32 %v566_v20, %v229_v17  ;;  %vm506_vm10 = vcmp.lt.s32.totalorder %v1190_v36, 120 }
 0x1bf   : > { %v1308_v63 = vpop.permute.xlu1 %448  ;;  %v1310_v0 = vpop.permute.xlu0 %446  ;;  %v558_v4 = vsel %vm268_vm0, %v353_v23, %v512_v57  ;;  %v557_v29 = vsel %vm268_vm0, %v354_v33, %v511_v56  ;;  %v230_v23 = vld [vmem:[#allocation2 + $0x50] sm:$0xff]  ;;  %v553_v56 = vrot.slane %v444_v24, 4  ;;  %v233_v57 = vld [vmem:[#allocation2 + $0x68] sm:$0xff] }
 0x1c0   : > { %v626_v35 = vmul.f32 %v558_v4, %v221_v58  ;;  %v625_v13 = vmul.f32 %v557_v29, %v220_v27  ;;  %v635_v55 = vmul.f32 %v567_v21, %v230_v23  ;;  %v640_v58 = vmul.f32 %v572_v49, %v235_v18  ;;  %v238_v24 = vld [vmem:[#allocation2 + $0x90] sm:$0xff] }
 0x1c1   : > { %v865_v62 = vpack.c.bf16 %v636_v46, %v634_v54  ;;  %v638_v4 = vmul.f32 %v570_v44, %v233_v57  ;;  %v451_v17 = vsel %vm450_vm5, %v1310_v0, %v1308_v63  ;;  %v236_v46 = vld [vmem:[#allocation2 + $0x80] sm:$0xff] }
 0x1c2   : > { %v857_v33 = vpack.c.bf16 %v628_v40, %v626_v35  ;;  %v859_v39 = vpack.c.bf16 %v1262_v43, %v625_v13  ;;  %v431_v40 = vsel %vm429_vm13, %v1204_v42, %v1192_v37  ;;  %v437_v43 = vsel %vm436_vm14, %v1202_v41, %v1218_v53  ;;  %v232_v53 = vld [vmem:[#allocation2 + $0x60] sm:$0xff] }
 0x1c3   : > { %v463_v25 = vpop.permute.xlu1 %462  ;;  %v461_v28 = vpop.permute.xlu0 %460  ;;  %v459_v37 = vsel %vm457_vm4, %v1234_v12, %v1216_v52  ;;  %v473_v41 = vsel %vm471_vm15, %v1271_v15, %v1232_v9  ;;  %v582_v42 = vrot.slane %v472_v50, 4  ;;  %v569_v27 = vsel %vm268_vm0, %v431_v40, %v547_v45  ;;  %v239_v15 = vld [vmem:[#allocation2 + $0x98] sm:$0xff]  ;;  %v240_v57 = vld [vmem:[#allocation2 + $0xa0] sm:$0xff] }
 0x1c4   : > { %858 = vmatprep.subr.bf16.mxu1 %v857_v33  ;;  %v465_v48 = vsel %vm464_vm3, %v461_v28, %v463_v25  ;;  %v571_v14 = vsel %vm268_vm0, %v437_v43, %v553_v56  ;;  %v452_v9 = vsel %vm450_vm5, %v1308_v63, %v1310_v0  ;;  %v576_v32 = vrot.slane %v459_v37, 4  ;;  %v241_v43 = vld [vmem:[#allocation2 + $0xa8] sm:$0xff]  ;;  %v243_v56 = vld [vmem:[#allocation2 + $0xb8] sm:$0xff] }
 0x1c5   : > { %860 = vmatpush1.bf16.msra.mxu1 %v859_v39  ;;  %v1375_v29 = vsel %vm268_vm0, %v465_v48, %v582_v42  ;;  %v581_v6 = vrot.slane %v473_v41, 4  ;;  %v867_v52 = vpack.c.bf16 %v635_v55, %v633_v38  ;;  %v637_v12 = vmul.f32 %v569_v27, %v232_v53 }
 0x1c6   : > { %862 = vmatprep.subr.bf16.mxu1 %v861_v47  ;;  %v466_v47 = vsel %vm464_vm3, %v463_v25, %v461_v28  ;;  %v639_v31 = vmul.f32 %v571_v14, %v234_v30  ;;  %v575_v35 = vrot.slane %v458_v59, 4  ;;  %v869_v13 = vpack.c.bf16 %v640_v58, %v638_v4  ;;  %v242_v14 = vld [vmem:[#allocation2 + $0xb0] sm:$0xff]  ;;  %v244_v59 = vld [vmem:[#allocation2 + $0xc0] sm:$0xff] }
 0x1c7   : > { %v484_v60 = vpop.permute.xlu1 %483  ;;  %v482_v61 = vpop.permute.xlu0 %481  ;;  %v610_v19 = vsel %vm268_vm0, %v452_v9, %v576_v32  ;;  %v611_v20 = vsel %vm268_vm0, %v466_v47, %v581_v6  ;;  %v644_v21 = vmul.f32 %v1375_v29, %v239_v15 }
 0x1c8   : > { %v486_v26 = vsel %vm485_vm6, %v482_v61, %v484_v60  ;;  %v487_v33 = vsel %vm485_vm6, %v484_v60, %v482_v61  ;;  %v609_v18 = vsel %vm268_vm0, %v451_v17, %v575_v35  ;;  %v642_v49 = vmul.f32 %v610_v19, %v237_v16  ;;  %v245_v60 = vld [vmem:[#allocation2 + $0xc8] sm:$0xff]  ;;  %v246_v35 = vld [vmem:[#allocation2 + $0xd0] sm:$0xff] }
 0x1c9   : > { %864 = vmatpush1.bf16.msra.mxu1 %v863_v34  ;;  %v871_v25 = vpack.c.bf16 %v639_v31, %v637_v12  ;;  %v643_v28 = vmul.f32 %v611_v20, %v238_v24  ;;  %v587_v34 = vrot.slane %v487_v33, 4  ;;  %v588_v38 = vrot.slane %v486_v26, 4  ;;  %v247_v31 = vld [vmem:[#allocation2 + $0xd8] sm:$0xff]  ;;  %v250_v26 = vld [vmem:[#allocation2 + $0xf0] sm:$0xff] }
 0x1ca   : > { %866 = vmatprep.subr.bf16.mxu1 %v865_v62  ;;  %v873_v58 = vpack.c.bf16 %v644_v21, %v642_v49  ;;  %v641_v37 = vmul.f32 %v609_v18, %v236_v46  ;;  %v650_v16 = vmul.f32 %v611_v20, %v245_v60  ;;  %v251_v33 = vld [vmem:[#allocation2 + $0xf8] sm:$0xff]  ;;  %v249_v18 = vld [vmem:[#allocation2 + $0xe8] sm:$0xff]  ;;  %v248_v49 = vld [vmem:[#allocation2 + $0xe0] sm:$0xff] }
 0x1cb   : > { %v491_v22 = vpop.permute.xlu1 %490  ;;  %v489_v23 = vpop.permute.xlu0 %488  ;;  %v256_v60 = vld [vmem:[#allocation2 + $0x120] sm:$0xf] }
 0x1cc   : > { %v493_v39 = vsel %vm492_vm7, %v489_v23, %v491_v22  ;;  %v494_v63 = vsel %vm492_vm7, %v491_v22, %v489_v23  ;;  %v875_v9 = vpack.c.bf16 %v643_v28, %v641_v37 }
 0x1cd   : > { %v594_v0 = vrot.slane %v494_v63, 4  ;;  %868 = vmatpush1.bf16.msra.mxu1 %v867_v52  ;;  %v593_v50 = vrot.slane %v493_v39, 4 }
 0x1ce   : > { %870 = vmatprep.subr.bf16.mxu1 %v869_v13  ;;  %v649_v13 = vmul.f32 %v1375_v29, %v244_v59 }
 0x1cf   : > { %v616_v54 = vsel %vm268_vm0, %v1115_v11, %v594_v0  ;;  %v477_v40 = vpop.permute.xlu1 %476  ;;  %v475_v55 = vpop.permute.xlu0 %474  ;;  %v615_v53 = vsel %vm268_vm0, %v1110_v10, %v593_v50  ;;  %v255_v50 = vld [vmem:[#allocation2 + $0x118] sm:$0xff] }
 0x1d0   : > { %v479_v44 = vsel %vm478_vm8, %v475_v55, %v477_v40  ;;  %v480_v48 = vsel %vm478_vm8, %v477_v40, %v475_v55  ;;  %v648_v30 = vmul.f32 %v616_v54, %v243_v56  ;;  %v647_v12 = vmul.f32 %v615_v53, %v242_v14 }
 0x1d1   : > { %v613_v41 = vsel %vm268_vm0, %v480_v48, %v587_v34  ;;  %v614_v42 = vsel %vm268_vm0, %v479_v44, %v588_v38  ;;  %872 = vmatpush1.bf16.msra.mxu1 %v871_v25  ;;  %v253_v38 = vld [vmem:[#allocation2 + $0x108] sm:$0xff] }
 0x1d2   : > { %v646_v27 = vmul.f32 %v614_v42, %v241_v43  ;;  %874 = vmatprep.subr.bf16.mxu1 %v873_v58  ;;  %v645_v61 = vmul.f32 %v613_v41, %v240_v57  ;;  %v254_v57 = vld [vmem:[#allocation2 + $0x110] sm:$0xff] }
 0x1d3   : > { %v498_v62 = vpop.permute.xlu1 %497  ;;  %v496_v4 = vpop.permute.xlu0 %495 }
 0x1d4   : > { %v500_v15 = vsel %vm499_vm9, %v496_v4, %v498_v62  ;;  %v501_v47 = vsel %vm499_vm9, %v498_v62, %v496_v4  ;;  %v877_v32 = vpack.c.bf16 %v648_v30, %v646_v27  ;;  %v879_v22 = vpack.c.bf16 %v647_v12, %v645_v61  ;;  %v257_v30 = vld [vmem:[#allocation2 + $0x128] sm:$0xf]  ;;  %v214_v62 = vld [vmem:[%s1463_s2] sm:$0xff]  ;;  %v217_v4 = vld [vmem:[%s1463_s2 + $0x18] sm:$0xff] }
 0x1d5   : > { %v599_v6 = vrot.slane %v500_v15, 4  ;;  %v600_v52 = vrot.slane %v501_v47, 4  ;;  %876 = vmatpush1.bf16.msra.mxu1 %v875_v9  ;;  %v621_v17 = vsel %vm268_vm0, %v501_v47, %v547_v45  ;;  %v622_v45 = vsel %vm268_vm0, %v500_v15, %v548_v51  ;;  %v218_v9 = vld [vmem:[%s1463_s2 + $0x20] sm:$0xf] }
 0x1d6   : > { %878 = vmatprep.subr.bf16.mxu1 %v877_v32  ;;  %v655_v34 = vmul.f32 %v621_v17, %v250_v26  ;;  %v656_v43 = vmul.f32 %v622_v45, %v251_v33  ;;  %v662_v59 = vmul.f32 %v1115_v11, %v257_v30  ;;  %v661_v61 = vmul.f32 %v1110_v10, %v256_v60 }
 0x1d7   : > { %v505_v19 = vpop.permute.xlu1 %504  ;;  %v503_v21 = vpop.permute.xlu0 %502  ;;  %v618_v23 = vsel %vm268_vm0, %v480_v48, %v600_v52  ;;  %v617_v24 = vsel %vm268_vm0, %v479_v44, %v599_v6  ;;  %v252_v44 = vld [vmem:[#allocation2 + $0x100] sm:$0xff] }
 0x1d8   : > { %v507_v39 = vsel %vm506_vm10, %v503_v21, %v505_v19  ;;  %v508_v29 = vsel %vm506_vm10, %v505_v19, %v503_v21  ;;  %v652_v20 = vmul.f32 %v618_v23, %v247_v31  ;;  %v651_v63 = vmul.f32 %v617_v24, %v246_v35 }
 0x1d9   : > { %v605_v0 = vrot.slane %v508_v29, 4  ;;  %v606_v46 = vrot.slane %v507_v39, 4  ;;  %880 = vmatpush1.bf16.msra.mxu1 %v879_v22  ;;  %v624_v54 = vsel %vm268_vm0, %v508_v29, %v600_v52  ;;  %v623_v48 = vsel %vm268_vm0, %v507_v39, %v599_v6 }
 0x1da   : > { %v881_v25 = vpack.c.bf16 %v652_v20, %v650_v16  ;;  %v883_v28 = vpack.c.bf16 %v651_v63, %v649_v13  ;;  %v658_v58 = vmul.f32 %v624_v54, %v253_v38  ;;  %v657_v27 = vmul.f32 %v623_v48, %v252_v44 }
 0x1db   : > { %v620_v36 = vsel %vm268_vm0, %v1110_v10, %v606_v46  ;;  %v619_v40 = vsel %vm268_vm0, %v1115_v11, %v605_v0  ;;  %v216_v11 = vld [vmem:[%s1463_s2 + $0x10] sm:$0xff]  ;;  %v219_v10 = vld [vmem:[%s1463_s2 + $0x28] sm:$0xf] }
 0x1dc   : > { %882 = vmatprep.subr.bf16.mxu1 %v881_v25  ;;  %v654_v51 = vmul.f32 %v620_v36, %v249_v18  ;;  %v653_v55 = vmul.f32 %v619_v40, %v248_v49  ;;  %v660_v56 = vmul.f32 %v620_v36, %v255_v50  ;;  %v659_v42 = vmul.f32 %v619_v40, %v254_v57 }
 0x1dd   : > { %884 = vmatpush1.bf16.msra.mxu1 %v883_v28 }
 0x1de   : > { %v885_v37 = vpack.c.bf16 %v656_v43, %v654_v51  ;;  %v887_v41 = vpack.c.bf16 %v655_v34, %v653_v55  ;;  %v889_v53 = vpack.c.bf16 %v660_v56, %v658_v58  ;;  %v891_v14 = vpack.c.bf16 %v659_v42, %v657_v27 }
 0x1e0   : > { %886 = vmatprep.subr.bf16.mxu1 %v885_v37 }
 0x1e1   : > { %888 = vmatpush1.bf16.msra.mxu1 %v887_v41 }
 0x1e2   : > { %890 = vmatprep.subr.bf16.mxu1 %v889_v53 }
 0x1e5   : > { %892 = vmatpush1.bf16.msra.mxu1 %v891_v14 }
 0x1e6   : > { %846 = vmatprep.subr.msk.mxu1 %vm268_vm0, %v662_v59 }
 0x1e9   : > { %847 = vmatpush1.msk.msra.mxu1 %vm268_vm0, %v661_v61 }
 0x1ea   : > { %743 = vmatmul.mubr.f32.vlgmr.msra.gmra.mrb[0].mxu1 %v214_v62 }
 0x1eb   : > { %849 = vmatprep.mubr.msk.f32.mxu1 %vm264_vm1, %v217_v4 }
 0x1ee   : > { %749 = vmatmul.mubr.f32.gmra.mrb[2].mxu1 %v216_v11 }
 0x1ef   : > { %850 = vmatprep.mubr.msk.f32.mxu1 %vm264_vm1, %v219_v10 }
 0x1f2   : > { %755 = vmatmul.mubr.f32.gmra.mrb[4].mxu1 %v218_v9 }
 0x2bd   : > { %v744_v15 = vpop.f32.mrb[0].mxu1 }
 0x2be   : > { %v745_v47 = vadd.f32 %v744_v15, %v1090_v3  ;;  %v746_v32 = vpop.f32.mrb[1].mxu1 }
 0x2bf   : > { %v747_v6 = vadd.f32 %v746_v32, %v1086_v1 }
 0x2c0   : > { %761 = vst [vmem:[%s212_s29] sm:$0xff] %v745_v47 }
 0x2c1   : > { %762 = vst [vmem:[%s212_s29 + $0x8] sm:$0xff] %v747_v6  ;;  %v750_v52 = vpop.f32.mrb[2].mxu1 }
 0x2c2   : > { %v751_v12 = vadd.f32 %v750_v52, %v1094_v5  ;;  %v752_v31 = vpop.f32.mrb[3].mxu1 }
 0x2c3   : > { %v753_v35 = vadd.f32 %v752_v31, %v1088_v2 }
 0x2c4   : > { %763 = vst [vmem:[%s212_s29 + $0x10] sm:$0xff] %v751_v12 }
 0x2c5   : > { %764 = vst [vmem:[%s212_s29 + $0x18] sm:$0xff] %v753_v35  ;;  %v756_v13 = vpop.f32.mrb[4].mxu1 }
 0x2c6   : > { %v757_v16 = vadd.f32 %v756_v13, %v1102_v8  ;;  %v758_v17 = vpop.f32.mrb[5].mxu1 }
 0x2c7   : > { %v759_v19 = vadd.f32 %v758_v17, %v1098_v7 }
 0x2c8   : > { %765 = vst [vmem:[%s212_s29 + $0x20] sm:$0xf] %v757_v16 }
 0x2c9   : > { %766 = vst [vmem:[%s212_s29 + $0x28] sm:$0xf] %v759_v19 }
 0x2ca PF: > { %s15_s15 = sadd.s32 1, %s977_s15  }
 0x2cb   : > { %p12_p3 = scmp.ge.s32.totalorder %s15_s15, 4  }
 0x2cd   :  { %14 = sbr.rel (!%p12_p3) target bundleno = 1 (0x1), region = 71 }
 0x2d4   :  { %788 = vsyncpa [#allocation3], 1 }
 0x2d5   :  { %790 = vsyncpa [#allocation3 + $0x1], 1 }

</bundles_post_ra>
